<compile_context>
chip_gen: v7x
topology: tpu7x:2x2x1
jax: 0.10.0
libtpu: 0.0.40
codegen_flags: <defaults>
</compile_context>

<pallas_src>
import functools

import jax
import jax.numpy as jnp
from jax import lax
from jax.experimental import pallas as pl
from jax.experimental.pallas import tpu as pltpu

GN_EPS = 1e-5
NUM_GROUPS = 32
_PAD = 8  # front pad rows of the flattened conv scratch (keeps every tap start >= 0)


# ----------------------------------------------------------------------------
# VMEM budget / tiling helpers
# ----------------------------------------------------------------------------
@functools.lru_cache(maxsize=None)
def _vmem_limit_bytes():
    cap = 64 * 1024 * 1024
    try:
        info = pltpu.get_tpu_info()
        cap = int(getattr(info, "vmem_capacity_bytes", cap))
    except Exception:
        pass
    # Leave headroom for compiler-internal scratch; never request the whole chip.
    return int(max(32 * 1024 * 1024, min(cap - 16 * 1024 * 1024, 112 * 1024 * 1024)))


def _choose_strip_rows(H, W, cin, cout, vmem_bytes):
    """Largest divisor of H whose per-strip working set stays well inside VMEM."""
    bytes_per_row = W * (2 * cin * 2      # bf16 input strip (double buffered)
                         + 2 * cin        # bf16 halo'd activation scratch
                         + 4 * cout       # f32 conv accumulator
                         + 4 * cout * 2)  # output block (double buffered, <= f32)
    budget = vmem_bytes // 4
    th = 1
    for cand in range(1, H + 1):
        if H % cand == 0 and cand * bytes_per_row <= budget:
            th = cand
    return th


# ----------------------------------------------------------------------------
# GN1 statistics pre-pass (per-strip per-channel sum / sum-of-squares)
# ----------------------------------------------------------------------------
def _gn_stats_kernel(x_ref, st_ref):
    _, TH, W, C = x_ref.shape
    rows = TH * W
    x = x_ref[0].reshape(rows, C).astype(jnp.float32)
    ones = jnp.ones((1, rows), jnp.float32)
    s = jnp.dot(ones, x, preferred_element_type=jnp.float32)        # (1, C)
    q = jnp.dot(ones, x * x, preferred_element_type=jnp.float32)    # (1, C)
    st_ref[0, 0] = jnp.concatenate([s, q], axis=0)                  # (2, C)


def _gn_partial_stats(x_nhwc, th):
    N, H, W, C = x_nhwc.shape
    S = H // th
    return pl.pallas_call(
        _gn_stats_kernel,
        out_shape=jax.ShapeDtypeStruct((N, S, 2, C), jnp.float32),
        grid=(N, S),
        in_specs=[pl.BlockSpec((1, th, W, C), lambda n, s: (n, s, 0, 0))],
        out_specs=pl.BlockSpec((1, 1, 2, C), lambda n, s: (n, s, 0, 0)),
        compiler_params=pltpu.CompilerParams(
            dimension_semantics=("parallel", "parallel"),
            vmem_limit_bytes=_vmem_limit_bytes()),
    )(x_nhwc)


def _gn_affine(partials, gamma, beta, hw):
    """Fold per-(n, group) stats + gamma/beta into per-channel scale/shift."""
    N, _, _, C = partials.shape
    cg = C // NUM_GROUPS
    tot = partials.sum(axis=1)                          # (N, 2, C)
    s_c, q_c = tot[:, 0], tot[:, 1]                     # (N, C)
    s_g = s_c.reshape(N, NUM_GROUPS, cg).sum(-1)        # (N, G)
    q_g = q_c.reshape(N, NUM_GROUPS, cg).sum(-1)
    cnt = float(hw * cg)
    mean_g = s_g / cnt
    var_g = jnp.maximum(q_g / cnt - mean_g * mean_g, 0.0)
    rstd_g = lax.rsqrt(var_g + GN_EPS)
    mean_c = jnp.repeat(mean_g, cg, axis=1)             # (N, C)
    rstd_c = jnp.repeat(rstd_g, cg, axis=1)
    scale = rstd_c * gamma[None, :]
    shift = beta[None, :] - mean_c * scale
    return scale.reshape(N, 1, C), shift.reshape(N, 1, C)


# ----------------------------------------------------------------------------
# Fused GroupNorm(precomputed) + SiLU + Conv3x3 (+ residual) strip kernel
# ----------------------------------------------------------------------------
def _make_stage_kernel(mode, emit_stats):
    """mode: 'none' (conv only), 'identity' (+x), 'proj' (+1x1-conv(x))."""

    def kernel(*refs):
        it = iter(refs)
        x_ref, xt_ref, xb_ref = next(it), next(it), next(it)
        sc_ref, sh_ref = next(it), next(it)
        w_ref, b_ref = next(it), next(it)
        id_ref = wr_ref = br_ref = None
        if mode != "none":
            id_ref = next(it)
            if mode == "proj":
                wr_ref, br_ref = next(it), next(it)
        o_ref = next(it)
        st_ref = next(it) if emit_stats else None
        xq_ref = next(it)

        _, TH, W, C = x_ref.shape
        Cout = w_ref.shape[-1]
        THW = TH * W
        TOP = _PAD            # flat-scratch row of padded row 0 (top halo)
        IMG = _PAD + W        # flat-scratch row of the strip's first image row

        s_id = pl.program_id(1)
        last = pl.num_programs(1) - 1
        scale = sc_ref[0]     # (1, C) f32: gamma * rstd (per image, per channel)
        shift = sh_ref[0]     # (1, C) f32: beta - mean * gamma * rstd

        def norm_act(v):      # GroupNorm (precomputed affine) + SiLU in f32 -> bf16
            y = v.astype(jnp.float32) * scale + shift
            return (y * jax.nn.sigmoid(y)).astype(jnp.bfloat16)

        # Strip body + 1-row halos into the flattened, padded bf16 scratch.
        xq_ref[IMG:IMG + THW, :] = norm_act(x_ref[0].reshape(THW, C))
        top = norm_act(xt_ref[0].reshape(W, C))
        bot = norm_act(xb_ref[0].reshape(W, C))
        xq_ref[TOP:TOP + W, :] = jnp.where(s_id == 0, jnp.zeros_like(top), top)
        xq_ref[IMG + THW:IMG + THW + W, :] = jnp.where(
            s_id == last, jnp.zeros_like(bot), bot)

        # 3x3 SAME conv = 9 row-offset slab matmuls (bf16 MXU operands, f32 acc).
        # The two scratch rows just outside the data region may hold stale VMEM,
        # but they are only read by the (dy=0,dx=0)/(dy=2,dx=2) taps at w==0/W-1,
        # which the column masks below replace with 0 -- no zero-fill needed.
        col = lax.broadcasted_iota(jnp.int32, (THW, 1), 0) % W
        acc = jnp.zeros((THW, Cout), jnp.float32)
        for dx in range(3):
            part = jnp.zeros((THW, Cout), jnp.float32)
            for dy in range(3):
                start = TOP + dy * W + dx - 1
                part = part + jnp.dot(xq_ref[start:start + THW, :], w_ref[dy, dx],
                                      preferred_element_type=jnp.float32)
            if dx == 0:        # w-1 wrapped into previous flat row: mask w == 0
                part = jnp.where(col == 0, 0.0, part)
            elif dx == 2:      # w+1 wrapped into next flat row: mask w == W-1
                part = jnp.where(col == W - 1, 0.0, part)
            acc = acc + part
        out = acc + b_ref[...]

        # Per-strip GroupNorm-2 partial statistics (MXU row reduction).
        if emit_stats:
            ones = jnp.ones((1, THW), jnp.float32)
            s = jnp.dot(ones, out, preferred_element_type=jnp.float32)
            q = jnp.dot(ones, out * out, preferred_element_type=jnp.float32)
            st_ref[0, 0] = jnp.concatenate([s, q], axis=0)

        # Residual branch (bf16 reads, f32 math).
        if mode == "identity":
            out = out + id_ref[0].reshape(THW, Cout).astype(jnp.float32)
        elif mode == "proj":
            Cid = id_ref.shape[-1]
            out = out + jnp.dot(id_ref[0].reshape(THW, Cid), wr_ref[...],
                                preferred_element_type=jnp.float32) + br_ref[...]

        o_ref[0] = out.reshape(TH, W, Cout).astype(o_ref.dtype)

    return kernel


def _fused_stage(x, scale, shift, w_hwio, cbias, *, th, out_dtype,
                 emit_stats=False, identity=None, res_w=None, res_b=None):
    N, H, W, C = x.shape
    Cout = w_hwio.shape[-1]
    S = H // th
    scratch_rows = _PAD + (th + 2) * W + 8

    if identity is None:
        mode = "none"
    elif res_w is None:
        assert identity.shape[-1] == Cout
        mode = "identity"
    else:
        mode = "proj"

    body = lambda n, s: (n, s, 0, 0)
    topm = lambda n, s: (n, jnp.maximum(s * th - 1, 0), 0, 0)      # clamp at image top
    botm = lambda n, s: (n, jnp.minimum((s + 1) * th, H - 1), 0, 0)  # clamp at bottom
    const2 = lambda n, s: (0, 0)
    const3 = lambda n, s: (n, 0, 0)
    const4 = lambda n, s: (0, 0, 0, 0)

    in_specs = [
        pl.BlockSpec((1, th, W, C), body),      # activation strip
        pl.BlockSpec((1, 1, W, C), topm),       # top halo row
        pl.BlockSpec((1, 1, W, C), botm),       # bottom halo row
        pl.BlockSpec((1, 1, C), const3),        # GN scale (per image)
        pl.BlockSpec((1, 1, C), const3),        # GN shift (per image)
        pl.BlockSpec((3, 3, C, Cout), const4),  # conv weight (constant block)
        pl.BlockSpec((1, Cout), const2),        # conv bias
    ]
    args = [x, x, x, scale, shift, w_hwio, cbias.reshape(1, Cout)]
    if identity is not None:
        Cid = identity.shape[-1]
        in_specs.append(pl.BlockSpec((1, th, W, Cid), body))
        args.append(identity)
        if res_w is not None:
            in_specs.append(pl.BlockSpec((Cid, Cout), const2))
            in_specs.append(pl.BlockSpec((1, Cout), const2))
            args.extend([res_w, res_b.reshape(1, Cout)])

    out_shapes = [jax.ShapeDtypeStruct((N, H, W, Cout), out_dtype)]
    out_specs = [pl.BlockSpec((1, th, W, Cout), body)]
    if emit_stats:
        out_shapes.append(jax.ShapeDtypeStruct((N, S, 2, Cout), jnp.float32))
        out_specs.append(pl.BlockSpec((1, 1, 2, Cout), body))

    return pl.pallas_call(
        _make_stage_kernel(mode, emit_stats),
        out_shape=tuple(out_shapes) if emit_stats else out_shapes[0],
        grid=(N, S),
        in_specs=in_specs,
        out_specs=tuple(out_specs) if emit_stats else out_specs[0],
        scratch_shapes=[pltpu.VMEM((scratch_rows, C), jnp.bfloat16)],
        compiler_params=pltpu.CompilerParams(
            dimension_semantics=("parallel", "parallel"),
            vmem_limit_bytes=_vmem_limit_bytes()),
    )(*args)


# ----------------------------------------------------------------------------
# ResidualBlock forward
# ----------------------------------------------------------------------------
def residual_block_forward(x_nchw, p, *, strip_rows=None):
    """ResidualBlock forward. x_nchw: (N, Cin, H, W) f32. Returns (N, Cout, H, W)."""
    N, Cin, H, W = x_nchw.shape
    Cout = p["conv1_w"].shape[0]
    assert Cin % NUM_GROUPS == 0 and Cout % NUM_GROUPS == 0, \
        "GroupNorm(32, C) needs C % 32 == 0"

    th = strip_rows or _choose_strip_rows(H, W, Cin, Cout, _vmem_limit_bytes())
    assert H % th == 0, (H, th)

    # NCHW -> NHWC once, cast to bf16 (read f32, write bf16).
    xh = jnp.transpose(x_nchw, (0, 2, 3, 1)).astype(jnp.bfloat16)

    w1 = jnp.transpose(p["conv1_w"], (2, 3, 1, 0)).astype(jnp.bfloat16)  # OIHW->HWIO
    w2 = jnp.transpose(p["conv2_w"], (2, 3, 1, 0)).astype(jnp.bfloat16)

    # GN1 statistics pre-pass (strip-tiled) -> per-channel affine.
    st1 = _gn_partial_stats(xh, th)
    sc1, sh1 = _gn_affine(st1, p["gn1_g"], p["gn1_b"], H * W)

    # Stage 1: GN1 + SiLU + conv1 (+ per-strip GN2 partials); bf16 intermediate.
    h, st2 = _fused_stage(xh, sc1, sh1, w1, p["conv1_b"], th=th,
                          out_dtype=jnp.bfloat16, emit_stats=True)
    sc2, sh2 = _gn_affine(st2, p["gn2_g"], p["gn2_b"], H * W)

    # Stage 2: GN2 + SiLU + conv2 + residual (identity or 1x1 projection).
    if Cin == Cout:
        out = _fused_stage(h, sc2, sh2, w2, p["conv2_b"], th=th,
                           out_dtype=jnp.float32, identity=xh)
    else:
        assert "res_w" in p and "res_b" in p
        wr = jnp.transpose(p["res_w"][:, :, 0, 0], (1, 0)).astype(jnp.bfloat16)
        out = _fused_stage(h, sc2, sh2, w2, p["conv2_b"], th=th,
                           out_dtype=jnp.float32, identity=xh,
                           res_w=wr, res_b=p["res_b"])
    return jnp.transpose(out, (0, 3, 1, 2))                         # NHWC -> NCHW


# ----------------------------------------------------------------------------
# Pure-JAX reference (for correctness check)
# ----------------------------------------------------------------------------
def _ref_gn(x, g, b):
    N, C, H, W = x.shape
    xg = x.reshape(N, NUM_GROUPS, -1)
    mean = xg.mean(-1, keepdims=True)
    var = xg.var(-1, keepdims=True)
    xn = ((xg - mean) / jnp.sqrt(var + GN_EPS)).reshape(N, C, H, W)
    return xn * g[None, :, None, None] + b[None, :, None, None]


def _ref_conv(x, w, b, pad):
    y = lax.conv_general_dilated(x, w, (1, 1), [(pad, pad), (pad, pad)],
                                 dimension_numbers=("NCHW", "OIHW", "NCHW"))
    return y + b[None, :, None, None]


def residual_block_ref(x, p):
    Cin = x.shape[1]
    Cout = p["conv1_w"].shape[0]
    silu = lambda t: t * jax.nn.sigmoid(t)
    h = silu(_ref_gn(x, p["gn1_g"], p["gn1_b"]))
    h = _ref_conv(h, p["conv1_w"], p["conv1_b"], 1)
    h = silu(_ref_gn(h, p["gn2_g"], p["gn2_b"]))
    h = _ref_conv(h, p["conv2_w"], p["conv2_b"], 1)
    res = x if Cin == Cout else _ref_conv(x, p["res_w"], p["res_b"], 0)
    return h + res


# ----------------------------------------------------------------------------
def make_params(key, cin, cout):
    ks = jax.random.split(key, 6)
    p = {
        "gn1_g": 1.0 + 0.1 * jax.random.normal(ks[0], (cin,), jnp.float32),
        "gn1_b": 0.1 * jax.random.normal(ks[1], (cin,), jnp.float32),
        "conv1_w": 0.05 * jax.random.normal(ks[2], (cout, cin, 3, 3), jnp.float32),
        "conv1_b": 0.05 * jax.random.normal(ks[3], (cout,), jnp.float32),
        "gn2_g": 1.0 + 0.1 * jax.random.normal(ks[4], (cout,), jnp.float32),
        "gn2_b": 0.1 * jax.random.normal(ks[5], (cout,), jnp.float32),
    }
    ks2 = jax.random.split(ks[5], 4)
    p["conv2_w"] = 0.05 * jax.random.normal(ks2[0], (cout, cout, 3, 3), jnp.float32)
    p["conv2_b"] = 0.05 * jax.random.normal(ks2[1], (cout,), jnp.float32)
    if cin != cout:
        p["res_w"] = 0.05 * jax.random.normal(ks2[2], (cout, cin, 1, 1), jnp.float32)
        p["res_b"] = 0.05 * jax.random.normal(ks2[3], (cout,), jnp.float32)
    return p


if __name__ == "__main__":
    key = jax.random.PRNGKey(0)
    N, H, W = 2, 8, 8
    k1, k2, k3 = jax.random.split(key, 3)

    # Case 1: in_channels != out_channels (1x1-conv residual projection),
    # strip_rows=4 -> 2 H-strips per image (exercises real inter-strip halos).
    # GroupNorm(32, C) needs C % 32 == 0, so channels are 32 -> 64.
    x = jax.random.normal(k1, (N, 32, H, W), jnp.float32)
    params = make_params(k2, 32, 64)
    out = jax.block_until_ready(residual_block_forward(x, params, strip_rows=4))
    ref = residual_block_ref(x, params)
    assert out.shape == (N, 64, H, W)
    err = float(jnp.max(jnp.abs(out - ref)))
    merr = float(jnp.mean(jnp.abs(out - ref)))
    # bf16 inputs / weights / intermediate => loose max-abs, tight mean-abs bound.
    assert err < 1e-1 and merr < 1e-2, (err, merr)

    # Case 2: in_channels == out_channels (identity residual), 32 -> 32,
    # strip_rows=2 -> 4 H-strips per image.
    params2 = make_params(k3, 32, 32)
    out2 = jax.block_until_ready(residual_block_forward(x, params2, strip_rows=2))
    ref2 = residual_block_ref(x, params2)
    assert out2.shape == (N, 32, H, W)
    err2 = float(jnp.max(jnp.abs(out2 - ref2)))
    merr2 = float(jnp.mean(jnp.abs(out2 - ref2)))
    assert err2 < 1e-1 and merr2 < 1e-2, (err2, merr2)

    print("KERNEL_OK")
</pallas_src>

<mosaic_0001>
module attributes {stable_mosaic.version = 11 : i64} {
  func.func @_gn_stats_kernel(%arg0: i32, %arg1: i32, %arg2: memref<1x4x8x32xbf16, #tpu.memory_space<vmem>>, %arg3: memref<1x1x2x32xf32, #tpu.memory_space<vmem>>) attributes {dimension_semantics = [#tpu.dimension_semantics<parallel>, #tpu.dimension_semantics<parallel>], iteration_bounds = array<i64: 2, 2>, scalar_prefetch = 0 : i64, scratch_operands = 0 : i64, tpu.core_type = #tpu.core_type<tc>, window_params = [{transform_indices = @transform_0, window_bounds = array<i64: 1, 4, 8, 32>}, {transform_indices = @transform_1, window_bounds = array<i64: 1, 1, 2, 32>}]} {
    %c0 = arith.constant 0 : index
    %c0_0 = arith.constant 0 : index
    %c0_1 = arith.constant 0 : index
    %c0_2 = arith.constant 0 : index
    %0 = vector.load %arg2[%c0, %c0_0, %c0_1, %c0_2] : memref<1x4x8x32xbf16, #tpu.memory_space<vmem>>, vector<1x4x8x32xbf16>
    %1 = vector.shape_cast %0 : vector<1x4x8x32xbf16> to vector<4x8x32xbf16>
    %2 = vector.shape_cast %1 : vector<4x8x32xbf16> to vector<32x32xbf16>
    %3 = arith.extf %2 : vector<32x32xbf16> to vector<32x32xf32>
    %cst = arith.constant 1.000000e+00 : f32
    %4 = vector.broadcast %cst : f32 to vector<1x32xf32>
    %cst_3 = arith.constant dense<0.000000e+00> : vector<1x32xf32>
    %5 = tpu.matmul %4, %3, %cst_3 {dimension_numbers = #tpu.dot_dimension_numbers<[1], [0], [0], [1], [0, 0, 1, 1], [], []>} : vector<1x32xf32>, vector<32x32xf32>, vector<1x32xf32> -> vector<1x32xf32>
    %6 = arith.mulf %3, %3 : vector<32x32xf32>
    %cst_4 = arith.constant dense<0.000000e+00> : vector<1x32xf32>
    %7 = tpu.matmul %4, %6, %cst_4 {dimension_numbers = #tpu.dot_dimension_numbers<[1], [0], [0], [1], [0, 0, 1, 1], [], []>} : vector<1x32xf32>, vector<32x32xf32>, vector<1x32xf32> -> vector<1x32xf32>
    %8 = tpu.concatenate %5, %7 in 0 : vector<1x32xf32>, vector<1x32xf32> -> vector<2x32xf32>
    %c0_5 = arith.constant 0 : index
    %c0_6 = arith.constant 0 : index
    %c0_7 = arith.constant 0 : index
    %c0_8 = arith.constant 0 : index
    %9 = vector.load %arg3[%c0_5, %c0_6, %c0_7, %c0_8] : memref<1x1x2x32xf32, #tpu.memory_space<vmem>>, vector<1x1x2x32xf32>
    %10 = vector.shape_cast %9 : vector<1x1x2x32xf32> to vector<2x32xf32>
    %11 = vector.shape_cast %8 : vector<2x32xf32> to vector<1x1x2x32xf32>
    tpu.vector_store %arg3[%c0_5, %c0_6, %c0_7, %c0_8], %11 {strides = array<i32>} : memref<1x1x2x32xf32, #tpu.memory_space<vmem>>, vector<1x1x2x32xf32>,
    return
  }
  func.func @transform_0(%arg0: i32, %arg1: i32) -> (i32, i32, i32, i32) {
    %c0_i32 = arith.constant 0 : i32
    %c0_i32_0 = arith.constant 0 : i32
    %c0_i32_1 = arith.constant 0 : i32
    return %arg0, %arg1, %c0_i32, %c0_i32_0 : i32, i32, i32, i32
  }
  func.func @transform_1(%arg0: i32, %arg1: i32) -> (i32, i32, i32, i32) {
    %c0_i32 = arith.constant 0 : i32
    %c0_i32_0 = arith.constant 0 : i32
    %c0_i32_1 = arith.constant 0 : i32
    return %arg0, %arg1, %c0_i32, %c0_i32_0 : i32, i32, i32, i32
  }
}

</mosaic_0001>

<bundles_post_ra>
// kernel: tpu_custom_call.1
= control target key start
LH: loop header
LB: loop body
LE: loop exit
PB: predicated region body
PF: predicated region fallthrough
CT: control target
= control target key end

     0   :  { %6 = vsyncpa [#allocation3], 0  ;;  %s916_s0 = inlined_call_operand.hbm [shape: bf16[2,8,8,32], index: 0, kind: input, shape index: {}]   ;;  %s917_s1 = inlined_call_operand.hbm [shape: f32[2,2,2,32], index: 1, kind: output, shape index: {}]  }
   0x1   :  { %8 = vsyncpa [#allocation3 + $0x1], 0 }
   0x2   :  { %9 = vsyncpa [#allocation4], 0 }
   0x3   :  { %11 = vsyncpa [#allocation4 + $0x1], 0  ;;  %s722_s6 = smov 0   ;;  %s724_s7 = smov 0  }
   0x4   :  { %s726_s8 = smov 0   ;;  %s728_s9 = smov 0  }
   0x5   :  { %s730_s10 = smov 0   ;;  %s732_s11 = smov 0  }
   0x6   :  { %s734_s12 = smov 0   ;;  %s736_s13 = smov 0  }
   0x7 LB: > { %s419_s14 = sadd.s32 4294967295, %s702_s13   ;;  %s420_s15 = sadd.s32 4294967294, %s702_s13   ;;  %s702_s13 = sphi %s736_s13, %s17_s13   ;;  %s698_s12 = sphi %s734_s12, %s932_s12   ;;  %s694_s11 = sphi %s732_s11, %s931_s11   ;;  %s690_s10 = sphi %s730_s10, %s930_s10   ;;  %s686_s9 = sphi %s728_s9, %s929_s9   ;;  %s682_s8 = sphi %s726_s8, %s928_s8   ;;  %s678_s7 = sphi %s724_s7, %s927_s7   ;;  %s674_s6 = sphi %s722_s6, %s926_s6  }
   0x8   : > { %s26_s16 = sadd.s32 1, %s694_s11  ;;  %s29_s17 = sadd.s32 1, %s698_s12 }
   0x9   : > { %p27_p0 = scmp.ge.s32.totalorder %s26_s16, 2  ;;  %s38_s18 = sadd.s32 1, %s682_s8 }
   0xa   : > { %p45_p1 = scmp.ne.s32.totalorder %s682_s8, %s678_s7  ;;  %p46_p2 = scmp.eq.s32.totalorder %s702_s13, 0 }
   0xb   : > { %s934_s16 = smov (%p27_p0, %s26_s16), 0  ;;  %s936_s17 = smov (!%p27_p0, %s29_s17), %s698_s12 }
   0xc   : > { %s34_s19 = ssub.s32 %s694_s11, %s934_s16  ;;  %p775_p3 = por %p46_p2, %p45_p1 }
   0xd   : > { %p31_p4 = scmp.ge.s32.totalorder %s936_s17, 2  ;;  %p51_p5 = scmp.ne.s32.totalorder %s678_s7, %s674_s6 }
   0xe   : > { %p52_p6 = scmp.eq.s32.totalorder %s419_s14, 0  ;;  %p77_p7 = scmp.eq.s32.totalorder %s419_s14, 3 }
   0xf   : > { %s938_s17 = smov (%p31_p4, %s936_s17), 0  ;;  %p83_p10 = scmp.eq.s32.totalorder %s420_s15, 3 }
  0x10   : > { %p783_p8 = por %p52_p6, %p51_p5  ;;  %p787_p9 = por %p77_p7, %p45_p1 }
  0x11   : > { %s33_s23 = ssub.s32 %s698_s12, %s938_s17  ;;  %p793_p12 = por %p83_p10, %p51_p5 }
  0x12   : > { %s921_s22 = scalar_select %p787_p9, 1, 0 }
  0x13   : > { %s35_s24 = sor.u32 %s34_s19, %s33_s23  ;;  %p502_p13 = scmp.lt.s32.totalorder %s702_s13, 4 }
  0x14   : > { %p36_p11 = scmp.eq.s32.totalorder %s35_s24, 0  ;;  %s103_s26 = sand.u32 1, %s682_s8  }
  0x15   : > { %s922_s25 = scalar_select %p793_p12, 1, 0 }
  0x16   : > { %s800_s27 = scalar_select %p36_p11, %s682_s8, %s38_s18  }
  0x17   : > { %s423_s28 = sshll.u32 %s103_s26, 4  ;;  %s424_s29 = sshll.u32 %s694_s11, 2 }
  0x18   : > { %s425_s30 = sshll.u32 %s698_s12, 3  ;;  %s107_s2 = scalar_lea.vmem [#allocation2], %s423_s28 }
  0x19   : > { %s116_s3 = sshll.u32 %s107_s2, 4  ;;  %s113_s4 = sadd.s32 %s425_s30, %s424_s29  ;;  %s804_s3 = int_to_ptr.vmem [resolvable:$true] %s116_s3 }
  0x1a   : > { %s426_s5 = sshll.u32 %s113_s4, 6  ;;  %p808_p0 = pnand %p502_p13, %p775_p3 }
  0x1b   : > { %s815_s18 = scalar_lea.hbm %s916_s0, %s426_s5  ;;  %s817_s23 = scalar_lea.sflag [#allocation3], %s103_s26 }
  0x1c   : > { %s574_s24 = scalar_lea.hbm %s815_s18, 256  ;;  %p576_p2 = pneg %p808_p0 }
  0x1d   : > { %p575_p1 = scmp.ne.s32.totalorder %s815_s18, %s574_s24  ;;  %s579_s29 = scalar_lea.hbm %s916_s0, 1024 }
  0x1e   : > { %p580_p5 = scmp.lt.u32.totalorder %s815_s18, %s916_s0  ;;  %p581_p6 = scmp.lt.u32.totalorder %s579_s29, %s574_s24 }
  0x1f   : > { %p577_p3 = pnand %p576_p2, %p575_p1  ;;  %p583_p10 = scmp.lt.u32.totalorder %s574_s24, %s815_s18 }
  0x20   : > { %p582_p7 = por %p581_p6, %p580_p5 }
  0x21   : > { %p578_p4 = pneg %p577_p3 }
  0x22   : > { %p584_p11 = por %p583_p10, %p582_p7 }
  0x24   : > { %p585_p13 = pnand %p584_p11, %p578_p4 }
  0x26   : > { %588 = shalt.err (!%p585_p13)
}
  0x27   : > { %s589_s26 = scalar_lea.vmem %s804_s3, 256  ;;  %s704_s4 = smov [#allocation2]  }
  0x28   : > { %p590_p1 = scmp.ne.s32.totalorder %s804_s3, %s589_s26  ;;  %s594_s5 = sshll.u32 %s704_s4, 4  ;;  %s595_s5 = int_to_ptr.vmem [resolvable:$false] %s594_s5 }
  0x29   : > { %s596_s15 = scalar_lea.vmem %s595_s5, 512  ;;  %p597_p9 = scmp.lt.s32.totalorder %s804_s3, %s595_s5 }
  0x2a   : > { %p592_p3 = pnand %p590_p1, %p576_p2  ;;  %p598_p5 = scmp.lt.s32.totalorder %s596_s15, %s589_s26 }
  0x2c   : > { %p593_p12 = pneg %p592_p3  ;;  %p599_p6 = por %p598_p5, %p597_p9 }
  0x2e   : > { %p600_p7 = pnand %p599_p6, %p593_p12 }
  0x30   : > { %603 = shalt.err (!%p600_p7)
}
  0x31   : > { %s705_s19 = smov 64   ;;  %s706_s24 = smov 4  }
  0x32   : > { %497 = dma.hbm_to_vmem [thread:$0]  (!%p808_p0), %s815_s18, 256, %s804_s3, %s817_s23, %s705_s19, %s705_s19, %s706_s24  }
  0x33   : > { %p427_p2 = scmp.ge.s32.totalorder %s702_s13, 1  ;;  %p124_p4 = scmp.lt.s32.totalorder %s702_s13, 5 }
  0x35   : > { %p125_p10 = pnand %p427_p2, %p124_p4 }
  0x36   : > { %s848_s20 = sand.u32 (!%p125_p10), 1, %s678_s7  }
  0x37   : > { %128 = sbr.rel (%p125_p10) target bundleno = 306 (0x132), region = 24  ;;  %s428_s28 = sshll.u32 (!%p125_p10), %s848_s20, 4 }
  0x38   : > { %s131_s29 = scalar_lea.sflag (!%p125_p10), [#allocation3], %s848_s20  ;;  %s134_s30 = scalar_lea.vmem (!%p125_p10), [#allocation2], %s428_s28 }
  0x3e   : > { %665 = dma.done.wait (%p783_p8), %s131_s29, 256  }
  0x3f   : > { %667 = vsyncadd (%p783_p8), %s131_s29, 4294967040  ;;  %v707_v0 = vmov 0.0|0.0   ;;  %vm708_vm0 = vmmov 0   ;;  %v709_v1 = vmov 0.0   ;;  %v438_v2 = vld [vmem:[%s134_s30] sm:$0xff]   ;;  %v445_v3 = vld [vmem:[%s134_s30 + $0x8] sm:$0xff]  }
  0x40   : > { %484 = vmatprep.subr.bf16.mxu1 %v707_v0  ;;  %478 = vmatprep.subr.bf16.mxu0 %v707_v0  ;;  %v439_v4 = vunpack.c.l.bf16 %v438_v2  ;;  %v440_v5 = vunpack.c.h.bf16 %v438_v2  ;;  %v443_v6 = vunpack.c.l.bf16 %v445_v3  ;;  %v444_v7 = vunpack.c.h.bf16 %v445_v3  ;;  %s429_s21 = sshll.u32 %s848_s20, 1  ;;  %s433_s3 = sshll.u32 %s690_s10, 1 }
  0x41   : > { %475 = vmatprep.mubr.msk.f32.mxu1 %vm708_vm0, %v709_v1  ;;  %464 = vmatprep.mubr.msk.f32.mxu0 %vm708_vm0, %v709_v1  ;;  %vm162_vm1 = vcmask 261120   ;;  %v710_v14 = vmov 1.0   ;;  %s329_s14 = sadd.s32 %s686_s9, %s433_s3  ;;  %s152_s23 = scalar_lea.vmem [#allocation5], %s429_s21  ;;  %vm313_vm2 = vcmask 1040384   ;;  %vm315_vm3 = vcmask 254976  }
  0x42   : > { %480 = vmatpush3.bf16.msra.mxu0 %v438_v2  ;;  %v236_v8 = vmul.f32 %v439_v4, %v439_v4  ;;  %v237_v9 = vmul.f32 %v440_v5, %v440_v5  ;;  %v238_v10 = vmul.f32 %v443_v6, %v443_v6  ;;  %v239_v11 = vmul.f32 %v444_v7, %v444_v7  ;;  %s434_s18 = sshll.u32 %s329_s14, 5  ;;  %s333_s2 = sshll.u32 %s152_s23, 4  ;;  %s864_s2 = int_to_ptr.vmem [resolvable:$true] %s333_s2 }
  0x43   : > { %481 = vmatprep.subr.bf16.mxu0 %v707_v0  ;;  %s862_s5 = scalar_lea.hbm %s917_s1, %s434_s18  ;;  %s318_s9 = scalar_lea.sflag [#allocation4], %s848_s20 }
  0x44   : > { %v485_v12 = vpack.c.bf16 %v237_v9, %v236_v8  ;;  %v488_v13 = vpack.c.bf16 %v239_v11, %v238_v10  ;;  %s604_s10 = scalar_lea.vmem %s864_s2, 32  ;;  %p924_p9 = scmp.ne.s32.totalorder %s921_s22, 0 }
  0x45   : > { %p605_p8 = scmp.ne.s32.totalorder %s864_s2, %s604_s10  ;;  %s711_s15 = smov [#allocation5]  }
  0x46   : > { %483 = vmatpush3.bf16.msra.mxu0 %v445_v3  ;;  %486 = vmatpush3.bf16.msra.mxu1 %v485_v12  ;;  %s608_s19 = sshll.u32 %s711_s15, 4  ;;  %s609_s19 = int_to_ptr.vmem [resolvable:$false] %s608_s19 }
  0x47   : > { %487 = vmatprep.subr.bf16.mxu1 %v707_v0  ;;  %p606_p12 = pnand %p605_p8, %p924_p9  ;;  %s610_s24 = scalar_lea.vmem %s609_s19, 64 }
  0x48   : > { %p611_p11 = scmp.lt.s32.totalorder %s864_s2, %s609_s19  ;;  %p612_p13 = scmp.lt.s32.totalorder %s610_s24, %s604_s10 }
  0x49   : > { %465 = vmatmul.mubr.msk.f32.vlgmr.msra.gmra.mrb[0].mxu0 %vm162_vm1, %v710_v14  ;;  %p607_p0 = pneg %p606_p12 }
  0x4a   : > { %489 = vmatpush3.bf16.msra.mxu1 %v488_v13  ;;  %p613_p1 = por %p612_p13, %p611_p11 }
  0x4c   : > { %p614_p3 = pnand %p613_p1, %p607_p0 }
  0x4d   : > { %476 = vmatmul.mubr.msk.f32.vlgmr.msra.gmra.mrb[0].mxu1 %vm162_vm1, %v710_v14 }
 0x11c   : > { %v232_v15 = vpop.f32.mrb[0].mxu0 }
 0x11d   : > { %v466_v16 = vpop.f32.mrb[1].mxu0 }
 0x120   : > { %v306_v17 = vpop.f32.mrb[0].mxu1 }
 0x121   : > { %v311_v18 = vrot.slane %v306_v17, 7  ;;  %v477_v19 = vpop.f32.mrb[1].mxu1 }
 0x123   : > { %v314_v20 = vsel %vm313_vm2, %v232_v15, %v311_v18 }
 0x124   : > { %316 = vst.msk [vmem:[%s152_s23] sm:$0x3] %vm315_vm3, %v314_v20 }
 0x125   : > { %617 = shalt.err (!%p614_p3)
}
 0x126   : > { %s618_s20 = scalar_lea.hbm %s862_s5, 32  ;;  %s622_s30 = scalar_lea.hbm %s917_s1, 128 }
 0x127   : > { %p619_p5 = scmp.ne.s32.totalorder %s862_s5, %s618_s20  ;;  %p623_p2 = scmp.lt.u32.totalorder %s862_s5, %s917_s1 }
 0x128   : > { %p624_p4 = scmp.lt.u32.totalorder %s622_s30, %s618_s20  ;;  %p626_p8 = scmp.lt.u32.totalorder %s618_s20, %s862_s5 }
 0x129   : > { %p620_p6 = pnand %p619_p5, %p924_p9 }
 0x12a   : > { %p625_p10 = por %p624_p4, %p623_p2 }
 0x12b   : > { %p621_p7 = pneg %p620_p6 }
 0x12c   : > { %p627_p12 = por %p626_p8, %p625_p10 }
 0x12e   : > { %p628_p0 = pnand %p627_p12, %p621_p7 }
 0x130   : > { %631 = shalt.err (!%p628_p0)
}
 0x131   : > { %492 = dma.vmem_to_hbm [thread:$0]  (%p924_p9), %s864_s2, 32, %s862_s5, %s318_s9  }
 0x132 PF: > { %p503_p11 = scmp.ge.s32.totalorder %s702_s13, 2  ;;  %s345_s14 = sand.u32 1, %s674_s6  }
 0x133   : > { %p925_p13 = scmp.ne.s32.totalorder %s922_s25, 0  ;;  %s346_s18 = scalar_lea.sflag [#allocation4], %s345_s14 }
 0x135   : > { %p499_p1 = pnand %p503_p11, %p925_p13 }
 0x137   : > { %669 = dma.done.wait (!%p499_p1), %s346_s18, 32  }
 0x138   : > { %671 = vsyncadd (!%p499_p1), %s346_s18, 4294967264  ;;  %s17_s13 = sadd.s32 1, %s702_s13   ;;  %s926_s6 = smov %s678_s7 }
 0x139   : > { %p14_p3 = scmp.ge.s32.totalorder %s17_s13, 6   ;;  %s927_s7 = smov %s682_s8 }
 0x13a   : > { %s928_s8 = smov %s800_s27  ;;  %s929_s9 = smov %s694_s11 }
 0x13b   : > { %s930_s10 = smov %s698_s12  ;;  %s931_s11 = smov %s934_s16 }
 0x13c   : > { %s932_s12 = smov %s938_s17  ;;  %16 = sbr.rel (!%p14_p3) target bundleno = 7 (0x7), region = 69 }
 0x143   :  { %351 = vsyncpa [#allocation3], 1 }
 0x144   :  { %353 = vsyncpa [#allocation3 + $0x1], 1 }
 0x145   :  { %354 = vsyncpa [#allocation4], 1 }
 0x146   :  { %356 = vsyncpa [#allocation4 + $0x1], 1 }

</bundles_post_ra>
